<compile_context>
chip_gen: v5e
topology: v5e:2x2
jax: 0.10.0
libtpu: 0.0.40
codegen_flags: <defaults>
</compile_context>

<pallas_src>
import functools

import jax
import jax.numpy as jnp
from jax.experimental import pallas as pl
from jax.experimental.pallas import tpu as pltpu


_MAX_BATCH_TILE = 512  # rows per grid step (f32); sized to fit v7x's 64 MiB VMEM easily


def _round_up(x, m):
    return (x + m - 1) // m * m


def _mlp_kernel(*refs, n_hidden):
    """Fused MLP. refs = (x_ref, w0, b0, w1, b1, ..., w_last_row, b_last, o_ref)."""
    x_ref = refs[0]
    o_ref = refs[-1]
    p = refs[1:-1]

    h = x_ref[...]                                            # (tile_b, num_state) f32
    for i in range(n_hidden):                                 # hidden Linear + ReLU (MXU)
        w = p[2 * i][...]                                     # (in_i, out_i)
        b = p[2 * i + 1][...]                                 # (1, out_i)
        h = jnp.dot(h, w, preferred_element_type=jnp.float32) + b
        h = jnp.maximum(h, 0.0)

    # Final layer (out_features == 1): VPU multiply + lane reduction instead of a
    # 1-column MXU matmul (avoids wasting a full MXU result push for one column).
    w_last = p[-2][...]                                       # (1, hidden_last)
    b_last = p[-1][...]                                       # (1, 1)
    v = jnp.sum(h * w_last, axis=-1, keepdims=True) + b_last  # (tile_b, 1)
    o_ref[...] = v.astype(o_ref.dtype)


def critic_forward(x, params):
    """Fused single-kernel forward of Critic. x: (B, num_state) -> (B, 1)."""
    B, num_state = x.shape
    n_hidden = len(params) - 1

    # Batch tiling: pad to a sublane (8) / tile multiple, slice the pad afterwards.
    if B <= _MAX_BATCH_TILE:
        tile_b = _round_up(max(B, 1), 8)
    else:
        tile_b = _MAX_BATCH_TILE
    b_pad = _round_up(B, tile_b)
    n_tiles = b_pad // tile_b
    if b_pad != B:
        x = jnp.pad(x, ((0, b_pad - B), (0, 0)))

    inputs = [x]
    in_specs = [pl.BlockSpec((tile_b, num_state), lambda i: (i, 0))]
    for li, (w, b) in enumerate(params):
        if li == n_hidden:                     # final layer: (H, 1) -> (1, H) row
            w = w.reshape(1, w.shape[0])
        inputs += [w, b]
        in_specs += [
            pl.BlockSpec(w.shape, lambda i: (0, 0)),   # weights VMEM-resident across grid
            pl.BlockSpec(b.shape, lambda i: (0, 0)),
        ]

    out = pl.pallas_call(
        functools.partial(_mlp_kernel, n_hidden=n_hidden),
        out_shape=jax.ShapeDtypeStruct((b_pad, 1), x.dtype),
        grid=(n_tiles,),
        in_specs=in_specs,
        out_specs=pl.BlockSpec((tile_b, 1), lambda i: (i, 0)),
        compiler_params=pltpu.CompilerParams(
            # Batch tiles are independent -> shard across TensorCores (v7x has 2/chip).
            dimension_semantics=("parallel",),
        ),
    )(*inputs)

    return out[:B]


def init_critic_params(key, num_state, layers):
    """nn.Linear-style init: U[-1/sqrt(fan_in), +1/sqrt(fan_in)], W stored as (in, out)."""
    dims = [num_state] + list(layers) + [1]
    params = []
    for i in range(len(dims) - 1):
        fan_in, fan_out = dims[i], dims[i + 1]
        key, kw, kb = jax.random.split(key, 3)
        bound = 1.0 / jnp.sqrt(jnp.float32(fan_in))
        w = jax.random.uniform(kw, (fan_in, fan_out), jnp.float32, -bound, bound)
        b = jax.random.uniform(kb, (1, fan_out), jnp.float32, -bound, bound)
        params.append((w, b))
    return params


def critic_forward_ref(x, params):
    n_hidden = len(params) - 1
    for i, (w, b) in enumerate(params):
        x = x @ w + b
        if i < n_hidden:
            x = jnp.maximum(x, 0.0)
    return x


if __name__ == "__main__":
    num_state = 8
    layers = [32, 32]

    key = jax.random.PRNGKey(0)
    key, kx, kx2 = jax.random.split(key, 3)
    params = init_critic_params(key, num_state, layers)

    # Small batch (single tile; batch padded 4 -> 8 internally).
    x = jax.random.normal(kx, (4, num_state), dtype=jnp.float32)
    value = jax.block_until_ready(critic_forward(x, params))
    ref = critic_forward_ref(x, params)
    assert value.shape == (4, 1)
    assert jnp.allclose(value, ref, atol=1e-5, rtol=1e-5), (value, ref)

    # Larger, non-multiple batch (padded 1000 -> 1024, two 512-row parallel tiles).
    x2 = jax.random.normal(kx2, (1000, num_state), dtype=jnp.float32)
    value2 = jax.block_until_ready(critic_forward(x2, params))
    ref2 = critic_forward_ref(x2, params)
    assert value2.shape == (1000, 1)
    assert jnp.allclose(value2, ref2, atol=1e-4, rtol=1e-4)

    print("KERNEL_OK")
</pallas_src>

<mosaic_0001>
module attributes {stable_mosaic.version = 11 : i64} {
  func.func @_mlp_kernel(%arg0: i32, %arg1: memref<8x8xf32, #tpu.memory_space<vmem>>, %arg2: memref<8x32xf32, #tpu.memory_space<vmem>>, %arg3: memref<1x32xf32, #tpu.memory_space<vmem>>, %arg4: memref<32x32xf32, #tpu.memory_space<vmem>>, %arg5: memref<1x32xf32, #tpu.memory_space<vmem>>, %arg6: memref<1x32xf32, #tpu.memory_space<vmem>>, %arg7: memref<1x1xf32, #tpu.memory_space<vmem>>, %arg8: memref<8x1xf32, #tpu.memory_space<vmem>>) attributes {dimension_semantics = [#tpu.dimension_semantics<parallel>], iteration_bounds = array<i64: 1>, scalar_prefetch = 0 : i64, scratch_operands = 0 : i64, tpu.core_type = #tpu.core_type<tc>, window_params = [{transform_indices = @transform_0, window_bounds = array<i64: 8, 8>}, {pipeline_mode = #tpu.pipeline_mode<synchronous>, transform_indices = @transform_1, window_bounds = array<i64: 8, 32>}, {pipeline_mode = #tpu.pipeline_mode<synchronous>, transform_indices = @transform_2, window_bounds = array<i64: 1, 32>}, {pipeline_mode = #tpu.pipeline_mode<synchronous>, transform_indices = @transform_3, window_bounds = array<i64: 32, 32>}, {pipeline_mode = #tpu.pipeline_mode<synchronous>, transform_indices = @transform_4, window_bounds = array<i64: 1, 32>}, {pipeline_mode = #tpu.pipeline_mode<synchronous>, transform_indices = @transform_5, window_bounds = array<i64: 1, 32>}, {pipeline_mode = #tpu.pipeline_mode<synchronous>, transform_indices = @transform_6, window_bounds = array<i64: 1, 1>}, {transform_indices = @transform_7, window_bounds = array<i64: 8, 1>}]} {
    %c0 = arith.constant 0 : index
    %c0_0 = arith.constant 0 : index
    %0 = vector.load %arg1[%c0, %c0_0] : memref<8x8xf32, #tpu.memory_space<vmem>>, vector<8x8xf32>
    %c0_1 = arith.constant 0 : index
    %c0_2 = arith.constant 0 : index
    %1 = vector.load %arg2[%c0_1, %c0_2] : memref<8x32xf32, #tpu.memory_space<vmem>>, vector<8x32xf32>
    %c0_3 = arith.constant 0 : index
    %c0_4 = arith.constant 0 : index
    %2 = vector.load %arg3[%c0_3, %c0_4] : memref<1x32xf32, #tpu.memory_space<vmem>>, vector<1x32xf32>
    %cst = arith.constant dense<0.000000e+00> : vector<8x32xf32>
    %3 = tpu.matmul %0, %1, %cst {dimension_numbers = #tpu.dot_dimension_numbers<[1], [0], [0], [1], [0, 0, 1, 1], [], []>} : vector<8x8xf32>, vector<8x32xf32>, vector<8x32xf32> -> vector<8x32xf32>
    %4 = vector.broadcast %2 : vector<1x32xf32> to vector<8x32xf32>
    %5 = arith.addf %3, %4 : vector<8x32xf32>
    %cst_5 = arith.constant 0.000000e+00 : f32
    %6 = vector.broadcast %cst_5 : f32 to vector<8x32xf32>
    %7 = arith.maximumf %5, %6 : vector<8x32xf32>
    %c0_6 = arith.constant 0 : index
    %c0_7 = arith.constant 0 : index
    %8 = vector.load %arg4[%c0_6, %c0_7] : memref<32x32xf32, #tpu.memory_space<vmem>>, vector<32x32xf32>
    %c0_8 = arith.constant 0 : index
    %c0_9 = arith.constant 0 : index
    %9 = vector.load %arg5[%c0_8, %c0_9] : memref<1x32xf32, #tpu.memory_space<vmem>>, vector<1x32xf32>
    %cst_10 = arith.constant dense<0.000000e+00> : vector<8x32xf32>
    %10 = tpu.matmul %7, %8, %cst_10 {dimension_numbers = #tpu.dot_dimension_numbers<[1], [0], [0], [1], [0, 0, 1, 1], [], []>} : vector<8x32xf32>, vector<32x32xf32>, vector<8x32xf32> -> vector<8x32xf32>
    %11 = vector.broadcast %9 : vector<1x32xf32> to vector<8x32xf32>
    %12 = arith.addf %10, %11 : vector<8x32xf32>
    %cst_11 = arith.constant 0.000000e+00 : f32
    %13 = vector.broadcast %cst_11 : f32 to vector<8x32xf32>
    %14 = arith.maximumf %12, %13 : vector<8x32xf32>
    %c0_12 = arith.constant 0 : index
    %c0_13 = arith.constant 0 : index
    %15 = vector.load %arg6[%c0_12, %c0_13] : memref<1x32xf32, #tpu.memory_space<vmem>>, vector<1x32xf32>
    %c0_14 = arith.constant 0 : index
    %c0_15 = arith.constant 0 : index
    %16 = vector.load %arg7[%c0_14, %c0_15] : memref<1x1xf32, #tpu.memory_space<vmem>>, vector<1x1xf32>
    %17 = vector.broadcast %15 : vector<1x32xf32> to vector<8x32xf32>
    %18 = arith.mulf %14, %17 : vector<8x32xf32>
    %cst_16 = arith.constant dense<0.000000e+00> : vector<8xf32>
    %19 = vector.multi_reduction <add>, %18, %cst_16 [1] : vector<8x32xf32> to vector<8xf32>
    %20 = vector.shape_cast %19 : vector<8xf32> to vector<8x1xf32>
    %21 = vector.broadcast %16 : vector<1x1xf32> to vector<8x1xf32>
    %22 = arith.addf %20, %21 : vector<8x1xf32>
    %c0_17 = arith.constant 0 : index
    %c0_18 = arith.constant 0 : index
    %23 = vector.load %arg8[%c0_17, %c0_18] : memref<8x1xf32, #tpu.memory_space<vmem>>, vector<8x1xf32>
    tpu.vector_store %arg8[%c0_17, %c0_18], %22 {strides = array<i32>} : memref<8x1xf32, #tpu.memory_space<vmem>>, vector<8x1xf32>,
    return
  }
  func.func @transform_0(%arg0: i32) -> (i32, i32) {
    %c0_i32 = arith.constant 0 : i32
    %c0_i32_0 = arith.constant 0 : i32
    return %arg0, %c0_i32 : i32, i32
  }
  func.func @transform_1(%arg0: i32) -> (i32, i32) {
    %c0_i32 = arith.constant 0 : i32
    %c0_i32_0 = arith.constant 0 : i32
    %c0_i32_1 = arith.constant 0 : i32
    return %c0_i32, %c0_i32_0 : i32, i32
  }
  func.func @transform_2(%arg0: i32) -> (i32, i32) {
    %c0_i32 = arith.constant 0 : i32
    %c0_i32_0 = arith.constant 0 : i32
    %c0_i32_1 = arith.constant 0 : i32
    return %c0_i32, %c0_i32_0 : i32, i32
  }
  func.func @transform_3(%arg0: i32) -> (i32, i32) {
    %c0_i32 = arith.constant 0 : i32
    %c0_i32_0 = arith.constant 0 : i32
    %c0_i32_1 = arith.constant 0 : i32
    return %c0_i32, %c0_i32_0 : i32, i32
  }
  func.func @transform_4(%arg0: i32) -> (i32, i32) {
    %c0_i32 = arith.constant 0 : i32
    %c0_i32_0 = arith.constant 0 : i32
    %c0_i32_1 = arith.constant 0 : i32
    return %c0_i32, %c0_i32_0 : i32, i32
  }
  func.func @transform_5(%arg0: i32) -> (i32, i32) {
    %c0_i32 = arith.constant 0 : i32
    %c0_i32_0 = arith.constant 0 : i32
    %c0_i32_1 = arith.constant 0 : i32
    return %c0_i32, %c0_i32_0 : i32, i32
  }
  func.func @transform_6(%arg0: i32) -> (i32, i32) {
    %c0_i32 = arith.constant 0 : i32
    %c0_i32_0 = arith.constant 0 : i32
    %c0_i32_1 = arith.constant 0 : i32
    return %c0_i32, %c0_i32_0 : i32, i32
  }
  func.func @transform_7(%arg0: i32) -> (i32, i32) {
    %c0_i32 = arith.constant 0 : i32
    %c0_i32_0 = arith.constant 0 : i32
    return %arg0, %c0_i32 : i32, i32
  }
}

</mosaic_0001>

<bundles_post_ra>
// kernel: tpu_custom_call.1
= control target key start
LH: loop header
LB: loop body
LE: loop exit
PB: predicated region body
PF: predicated region fallthrough
CT: control target
= control target key end

     0   :  { %s312_s0 = inlined_call_operand.hbm [shape: f32[8,8], index: 0, kind: input, shape index: {}]   ;;  %s313_s1 = inlined_call_operand.hbm [shape: f32[8,32], index: 1, kind: input, shape index: {}]   ;;  %s314_s2 = inlined_call_operand.vmem [shape: f32[1,32], index: 2, kind: input, shape index: {}]   ;;  %s315_s3 = inlined_call_operand.hbm [shape: f32[32,32], index: 3, kind: input, shape index: {}]   ;;  %s316_s4 = inlined_call_operand.vmem [shape: f32[1,32], index: 4, kind: input, shape index: {}]   ;;  %s317_s5 = inlined_call_operand.vmem [shape: f32[1,32], index: 5, kind: input, shape index: {}]   ;;  %s318_s6 = inlined_call_operand.<no memory space> [shape: f32[1,1], index: 6, kind: input, shape index: {}]   ;;  %s319_s7 = inlined_call_operand.vmem [shape: f32[8,1], index: 7, kind: output, shape index: {}]  }
   0x1   :  { %v12_v0 = vstv %s318_s6 }
   0x2   :  { %13 = vst [vmem:[#allocation2] sm:$0x1] %v12_v0 }
   0x3   :  { %14 = vsyncpa [#allocation4], 0 }
   0x4   :  { %15 = vsyncpa [#allocation6], 0  ;;  %s32_s28 = sshll.u32 %s313_s1, 4  ;;  %s243_s29 = smov [#allocation5]   ;;  %s33_s28 = int_to_ptr.hbm [resolvable:$true] %s32_s28 }
   0x5   :  { %s34_s30 = sshll.u32 %s243_s29, 4  ;;  %s21_s10 = sshll.u32 %s312_s0, 4  ;;  %s35_s30 = int_to_ptr.vmem [resolvable:$true] %s34_s30  ;;  %s22_s10 = int_to_ptr.hbm [resolvable:$true] %s21_s10 }
   0x6   :  { %37 = dma.hbm_to_vmem [thread:$0]  %s33_s28, 128, %s35_s30, [#allocation6]  }
   0x7   :  { %s244_s11 = smov [#allocation3]   ;;  %s44_s14 = sshll.u32 %s315_s3, 4  ;;  %s45_s14 = int_to_ptr.hbm [resolvable:$true] %s44_s14 }
   0x8   :  { %s23_s12 = sshll.u32 %s244_s11, 4  ;;  %s245_s1 = smov [#allocation7]   ;;  %s24_s12 = int_to_ptr.vmem [resolvable:$true] %s23_s12 }
   0x9   :  { %26 = dma.hbm_to_vmem [thread:$0]  %s22_s10, 128, %s24_s12, [#allocation4]  }
   0xa   :  { %s46_s15 = sshll.u32 %s245_s1, 4  ;;  %s246_s16 = smov 128   ;;  %s47_s15 = int_to_ptr.vmem [resolvable:$true] %s46_s15 }
   0xb   :  { %s247_s17 = smov 8  }
   0xc   :  { %52 = dma.hbm_to_vmem [thread:$0]  %s45_s14, 512, %s47_s15, [#allocation6], %s246_s16, %s246_s16, %s247_s17  }
   0xd   :  { %239 = dma.done.wait [#allocation4], 128  }
   0xe   :  { %240 = vsyncadd [#allocation4], 4294967168 }
   0xf   :  { %241 = dma.done.wait [#allocation6], 640  }
  0x10   :  { %242 = vsyncadd [#allocation6], 4294966656  ;;  %vm77_vm0 = vcmask 64512   ;;  %v72_v1 = vld [vmem:[#allocation5] sm:$0xff]  ;;  %v71_v2 = vld [vmem:[#allocation3] sm:$0xff]  ;;  %vm110_vm1 = vcmask 261120  }
  0x11   :  { %v105_v3 = vld [vmem:[#allocation7 + $0x18] sm:$0xff]  ;;  %96 = vmatpush.msra.mxu0 %v72_v1  ;;  %v104_v4 = vld [vmem:[#allocation7 + $0x10] sm:$0xff]  ;;  %v103_v5 = vld [vmem:[#allocation7 + $0x8] sm:$0xff]  ;;  %vm148_vm2 = vcmask 7168  }
  0x12   :  { %126 = vmatpush.msra.mxu1 %v105_v3  ;;  %156 = vmatmul.msk.f32.vlgmr.msra.gmra.mxu0 %vm77_vm0, %v71_v2  ;;  %v102_v6 = vld [vmem:[#allocation7] sm:$0xff]  ;;  %v163_v7 = vld [vmem:[%s314_s2] ss:$0 sm:$0xff] }
  0x13   :  { %v164_v11 = vld [vmem:[%s316_s4] ss:$0 sm:$0xff] }
  0x14   :  { %127 = vmatpush.msra.mxu1 %v104_v4  ;;  %v165_v14 = vld [vmem:[%s317_s5] ss:$0 sm:$0xff] }
  0x15   :  { %v166_v18 = vld [vmem:[#allocation2] ss:$0 sm:$0xff] }
  0x16   :  { %128 = vmatpush.msra.mxu1 %v103_v5 }
  0x18   :  { %129 = vmatpush.msra.mxu1 %v102_v6 }
  0x8f   :  { %v98_v8 = vpop.f32.mrf.mxu0 }
  0x90   :  { %v99_v9 = vadd.f32 %v163_v7, %v98_v8 }
  0x92   :  { %v101_v10 = vmax.f32 %v99_v9, 0.0 }
  0x94   :  { %157 = vmatmul.msk.f32.vlgmr.msra.gmra.mxu1 %vm110_vm1, %v101_v10 }
 0x111   :  { %v131_v12 = vpop.f32.mrf.mxu1 }
 0x112   :  { %v132_v13 = vadd.f32 %v164_v11, %v131_v12 }
 0x114   :  { %v134_v15 = vmax.f32 %v132_v13, 0.0 }
 0x116   :  { %v140_v16 = vmul.f32 %v165_v14, %v134_v15 }
 0x118   :  { %v141_v17 = vsel %vm110_vm1, %v140_v16, 0.0 }
 0x119   :  { %142 = vadd.xlane.f32.xlu0 %v141_v17 }
 0x18c   :  { %v143_v19 = vpop.xlane.xlu0 %142 }
 0x18d   :  { %v147_v20 = vadd.f32 %v166_v18, %v143_v19 }
 0x18f   :  { %149 = vst.msk [vmem:[%s319_s7] sm:$0xff] %vm148_vm2, %v147_v20 }
 0x190   :  { %154 = vsyncpa [#allocation4], 1 }
 0x191   :  { %155 = vsyncpa [#allocation6], 1 }

</bundles_post_ra>
